<compile_context>
chip_gen: v7x
topology: tpu7x:2x2x1
jax: 0.10.0
libtpu: 0.0.40
codegen_flags: <defaults>
</compile_context>

<pallas_src>
import functools

import jax
import jax.numpy as jnp
from jax import lax
from jax.experimental import pallas as pl
from jax.experimental.pallas import tpu as pltpu

EPS = 1e-5


def _round_up(v, m):
    return -(-v // m) * m


# ---------------------------------------------------------------------------
# Single-pass kernel: the whole row (H*W) is resident in one block.
# ---------------------------------------------------------------------------
def _adain_kernel(x_ref, gb_ref, o_ref, *, hw):
    # x_ref/o_ref: (row_tile, hw_blk); gb_ref: (row_tile, 2) = [gamma | beta]
    x = x_ref[...].astype(jnp.float32)
    hw_blk = x.shape[-1]
    inv_hw = jnp.float32(1.0 / hw)

    if hw_blk != hw:
        # HW < 128 pad path only: mask padded lanes out of the statistics.
        col = lax.broadcasted_iota(jnp.int32, x.shape, 1)
        valid = col < hw
        mean = jnp.sum(jnp.where(valid, x, 0.0), axis=-1, keepdims=True) * inv_hw
        xc = x - mean
        var = jnp.sum(jnp.where(valid, xc * xc, 0.0), axis=-1, keepdims=True) * inv_hw
    else:
        mean = jnp.sum(x, axis=-1, keepdims=True) * inv_hw
        xc = x - mean
        var = jnp.sum(xc * xc, axis=-1, keepdims=True) * inv_hw  # biased (InstanceNorm2d)

    gb = gb_ref[...].astype(jnp.float32)
    scale = gb[:, 0:1] * lax.rsqrt(var + EPS)   # gamma / sqrt(var + eps)
    shift = gb[:, 1:2] - mean * scale           # beta - mean * scale
    # TODO(synk): optionally run this epilogue in bf16 on v6e/v7x (kept f32 for v5e).
    o_ref[...] = (x * scale + shift).astype(o_ref.dtype)


# ---------------------------------------------------------------------------
# Two-pass kernel for images whose full row does not fit the VMEM budget.
# grid = (row_tiles, 2, hw_tiles): pass 0 accumulates per-row statistics
# (Chan parallel-variance combine, numerically robust), pass 1 normalizes.
# ---------------------------------------------------------------------------
def _adain_two_pass_kernel(x_ref, gb_ref, o_ref,
                           mean_ref, m2_ref, scale_ref, shift_ref, *, hw, hw_tile):
    p = pl.program_id(1)
    j = pl.program_id(2)

    @pl.when(jnp.logical_and(p == 0, j == 0))
    def _():
        mean_ref[...] = jnp.zeros_like(mean_ref)
        m2_ref[...] = jnp.zeros_like(m2_ref)

    @pl.when(p == 0)
    def _():
        x = x_ref[...].astype(jnp.float32)
        # mask the (possibly partial) last HW tile out of the statistics
        limit = hw - j * hw_tile
        col = lax.broadcasted_iota(jnp.int32, x.shape, 1)
        valid = col < limit
        cnt = jnp.minimum(limit, hw_tile).astype(jnp.float32)
        mean_b = jnp.sum(jnp.where(valid, x, 0.0), axis=-1, keepdims=True) / cnt
        xc = jnp.where(valid, x - mean_b, 0.0)
        m2_b = jnp.sum(xc * xc, axis=-1, keepdims=True)
        # Chan combine of running (n_a, mean, M2) with this tile's (cnt, mean_b, m2_b)
        n_a = (j * hw_tile).astype(jnp.float32)
        n = n_a + cnt
        delta = mean_b - mean_ref[...]
        mean_ref[...] = mean_ref[...] + delta * (cnt / n)
        m2_ref[...] = m2_ref[...] + m2_b + (delta * delta) * (n_a * cnt / n)

    @pl.when(jnp.logical_and(p == 1, j == 0))
    def _():
        var = m2_ref[...] * jnp.float32(1.0 / hw)   # biased variance
        gb = gb_ref[...].astype(jnp.float32)
        scale = gb[:, 0:1] * lax.rsqrt(var + EPS)
        scale_ref[...] = scale
        shift_ref[...] = gb[:, 1:2] - mean_ref[...] * scale

    @pl.when(p == 1)
    def _():
        x = x_ref[...].astype(jnp.float32)
        o_ref[...] = (x * scale_ref[...] + shift_ref[...]).astype(o_ref.dtype)


# ---------------------------------------------------------------------------
# Wrapper
# ---------------------------------------------------------------------------
def adaptive_instance_norm(x, style, weight_t, bias, *,
                           force_two_pass=False, hw_tile_override=None):
    """x: (N, C, H, W); style: (N, S); weight_t: (S, 2C); bias: (2C,)."""
    N, C, H, W = x.shape
    HW = H * W
    rows = N * C
    itemsize = jnp.dtype(x.dtype).itemsize

    # --- style = Linear(style): tiny matmul, leave to XLA (fuses, no launch) ---
    style_out = style.astype(jnp.float32) @ weight_t + bias[None, :]
    gamma = style_out[:, :C].reshape(rows)
    beta = style_out[:, C:].reshape(rows)
    gb = jnp.stack([gamma, beta], axis=1)           # (rows, 2) float32

    x2d = x.reshape(rows, HW)

    # sublane quantum: 8 for 4-byte dtypes, 16 for bf16/fp16, 32 for 1-byte
    sub = 8 if itemsize >= 4 else (16 if itemsize == 2 else 32)

    try:
        vmem_cap = int(pltpu.get_tpu_info().vmem_capacity_bytes)
    except Exception:
        vmem_cap = 64 * 1024 * 1024                 # conservative (v7x per-core VMEM)
    vmem_cap_lim = vmem_cap * 3 // 4

    # HW < 128: pad to one lane group (masked-vst penalty regime); otherwise the
    # block's last dim is the full HW -> no pad, no slice, no mask math.
    if HW < 128:
        hw_blk = 128
        x2d = jnp.pad(x2d, ((0, 0), (0, hw_blk - HW)))
    else:
        hw_blk = HW

    def vmem_need(rt, cols):
        # 2x double-buffered in + 2x double-buffered out + ~3 f32 full-tile
        # temporaries + lane-padded (rt, 2) gamma/beta buffers + headroom.
        return (rt * cols * (4 * itemsize + 12)
                + rt * 128 * 4 * 2
                + (2 << 20))

    min_row_tile = rows if rows <= sub else sub
    use_two_pass = force_two_pass or vmem_need(min_row_tile, hw_blk) > vmem_cap_lim

    if not use_two_pass:
        # ----- single-pass path: one block holds full rows -----
        row_f32_bytes = hw_blk * 4
        if rows <= sub:
            row_tile = rows
        else:
            block_budget = vmem_cap // 16           # f32 bytes for the x block itself
            tile_vmem = max(sub, (block_budget // row_f32_bytes) // sub * sub)
            tile_pipe = _round_up(pl.cdiv(rows, 8), sub)              # ~8 grid steps
            tile_floor = _round_up(min(rows, pl.cdiv(1 << 20, row_f32_bytes)), sub)
            row_tile = min(tile_vmem, max(tile_pipe, tile_floor))
            row_tile = max(sub, min(row_tile, _round_up(rows, sub)))
            # prefer an even step count (v7x: 2 TensorCores share the row axis)
            steps = pl.cdiv(rows, row_tile)
            if steps > 2 and steps % 2 == 1:
                alt = _round_up(pl.cdiv(rows, steps + 1), sub)
                if sub <= alt <= row_tile and pl.cdiv(rows, alt) % 2 == 0:
                    row_tile = alt
        grid = (pl.cdiv(rows, row_tile),)
        vmem_limit = int(min(vmem_cap_lim,
                             max(vmem_need(row_tile, hw_blk) + (2 << 20), 32 << 20)))

        out2d = pl.pallas_call(
            functools.partial(_adain_kernel, hw=HW),
            out_shape=jax.ShapeDtypeStruct((rows, hw_blk), x.dtype),
            grid=grid,
            in_specs=[
                pl.BlockSpec((row_tile, hw_blk), lambda i: (i, 0)),
                pl.BlockSpec((row_tile, 2), lambda i: (i, 0)),
            ],
            out_specs=pl.BlockSpec((row_tile, hw_blk), lambda i: (i, 0)),
            compiler_params=pltpu.CompilerParams(
                dimension_semantics=("parallel",),
                vmem_limit_bytes=vmem_limit,
            ),
        )(x2d, gb)
    else:
        # ----- two-pass path: HW too large for a full-row block in VMEM -----
        row_tile = rows if rows <= sub else sub
        hw_cap = max(128, (hw_blk // 128) * 128)
        if hw_tile_override is not None:
            hw_tile = min(hw_tile_override, hw_cap)
        else:
            budget = vmem_cap // 12                 # f32 bytes for the x block
            hw_tile = max(128, (budget // (row_tile * 4)) // 128 * 128)
            hw_tile = min(hw_tile, hw_cap)
        grid = (pl.cdiv(rows, row_tile), 2, pl.cdiv(hw_blk, hw_tile))
        vmem_limit = int(min(vmem_cap_lim,
                             max(vmem_need(row_tile, hw_tile) + (2 << 20), 32 << 20)))

        out2d = pl.pallas_call(
            functools.partial(_adain_two_pass_kernel, hw=HW, hw_tile=hw_tile),
            out_shape=jax.ShapeDtypeStruct((rows, hw_blk), x.dtype),
            grid=grid,
            in_specs=[
                pl.BlockSpec((row_tile, hw_tile), lambda i, p, j: (i, j)),
                pl.BlockSpec((row_tile, 2), lambda i, p, j: (i, 0)),
            ],
            # pass 0 parks the output window at (i, 0) (never written there),
            # pass 1 walks it across the row -> each block written exactly once.
            out_specs=pl.BlockSpec((row_tile, hw_tile), lambda i, p, j: (i, p * j)),
            scratch_shapes=[
                pltpu.VMEM((row_tile, 1), jnp.float32),   # running mean
                pltpu.VMEM((row_tile, 1), jnp.float32),   # running M2
                pltpu.VMEM((row_tile, 1), jnp.float32),   # scale
                pltpu.VMEM((row_tile, 1), jnp.float32),   # shift
            ],
            compiler_params=pltpu.CompilerParams(
                dimension_semantics=("parallel", "arbitrary", "arbitrary"),
                vmem_limit_bytes=vmem_limit,
            ),
        )(x2d, gb)

    if hw_blk != HW:
        out2d = out2d[:, :HW]
    return out2d.reshape(N, C, H, W)


def init_params(key, in_channel, style_dim):
    """Deterministic init matching the PyTorch module's __init__."""
    out_dim = 2 * in_channel
    std = (2.0 / (style_dim + out_dim)) ** 0.5      # xavier_normal on (2C, S)
    w_torch = std * jax.random.normal(key, (out_dim, style_dim), dtype=jnp.float32)
    weight_t = w_torch.T                            # (S, 2C) so forward does x @ W.T
    bias = jnp.concatenate(
        [jnp.ones((in_channel,), jnp.float32), jnp.zeros((in_channel,), jnp.float32)]
    )
    return weight_t, bias


def _reference(x, style, weight_t, bias):
    s = style @ weight_t + bias[None, :]
    C = x.shape[1]
    gamma = s[:, :C][:, :, None, None]
    beta = s[:, C:][:, :, None, None]
    mean = jnp.mean(x, axis=(2, 3), keepdims=True)
    var = jnp.mean((x - mean) ** 2, axis=(2, 3), keepdims=True)
    norm = (x - mean) / jnp.sqrt(var + EPS)
    return gamma * norm + beta


if __name__ == "__main__":
    key = jax.random.PRNGKey(0)
    k_x, k_s, k_w, k_x2, k_x3 = jax.random.split(key, 5)

    N, C, style_dim = 2, 4, 8
    weight_t, bias = init_params(k_w, C, style_dim)
    style = jax.random.normal(k_s, (N, style_dim), dtype=jnp.float32)

    # 1) single-pass path, HW a multiple of 128
    x = jax.random.normal(k_x, (N, C, 16, 16), dtype=jnp.float32)
    out = jax.block_until_ready(adaptive_instance_norm(x, style, weight_t, bias))
    assert out.shape == x.shape
    assert jnp.allclose(out, _reference(x, style, weight_t, bias), atol=1e-4, rtol=1e-4)

    # 2) single-pass path with a full-dim, non-128-multiple last dim (no padding)
    x_odd = jax.random.normal(k_x2, (N, C, 13, 13), dtype=jnp.float32)
    out_odd = jax.block_until_ready(adaptive_instance_norm(x_odd, style, weight_t, bias))
    assert jnp.allclose(out_odd, _reference(x_odd, style, weight_t, bias),
                        atol=1e-4, rtol=1e-4)

    # 3) small-HW (< 128) pad path
    x_small = jax.random.normal(k_x3, (N, C, 8, 8), dtype=jnp.float32)
    out_small = jax.block_until_ready(adaptive_instance_norm(x_small, style, weight_t, bias))
    assert jnp.allclose(out_small, _reference(x_small, style, weight_t, bias),
                        atol=1e-4, rtol=1e-4)

    # 4) two-pass large-image path, forced at a small shape to exercise it
    out_tp = jax.block_until_ready(
        adaptive_instance_norm(x, style, weight_t, bias,
                               force_two_pass=True, hw_tile_override=128))
    assert jnp.allclose(out_tp, _reference(x, style, weight_t, bias),
                        atol=1e-4, rtol=1e-4)

    print("KERNEL_OK")
</pallas_src>

<mosaic_0001>
module attributes {stable_mosaic.version = 11 : i64} {
  func.func @_adain_kernel(%arg0: i32, %arg1: memref<8x256xf32, #tpu.memory_space<vmem>>, %arg2: memref<8x2xf32, #tpu.memory_space<vmem>>, %arg3: memref<8x256xf32, #tpu.memory_space<vmem>>) attributes {dimension_semantics = [#tpu.dimension_semantics<parallel>], iteration_bounds = array<i64: 1>, scalar_prefetch = 0 : i64, scratch_operands = 0 : i64, tpu.core_type = #tpu.core_type<tc>, window_params = [{transform_indices = @transform_0, window_bounds = array<i64: 8, 256>}, {transform_indices = @transform_1, window_bounds = array<i64: 8, 2>}, {transform_indices = @transform_2, window_bounds = array<i64: 8, 256>}]} {
    %c0 = arith.constant 0 : index
    %c0_0 = arith.constant 0 : index
    %0 = vector.load %arg1[%c0, %c0_0] : memref<8x256xf32, #tpu.memory_space<vmem>>, vector<8x256xf32>
    %cst = arith.constant dense<0.000000e+00> : vector<8xf32>
    %1 = vector.multi_reduction <add>, %0, %cst [1] : vector<8x256xf32> to vector<8xf32>
    %2 = vector.shape_cast %1 : vector<8xf32> to vector<8x1xf32>
    %cst_1 = arith.constant 3.906250e-03 : f32
    %3 = vector.broadcast %cst_1 : f32 to vector<8x1xf32>
    %4 = arith.mulf %2, %3 : vector<8x1xf32>
    %5 = vector.broadcast %4 : vector<8x1xf32> to vector<8x256xf32>
    %6 = arith.subf %0, %5 : vector<8x256xf32>
    %7 = arith.mulf %6, %6 : vector<8x256xf32>
    %cst_2 = arith.constant dense<0.000000e+00> : vector<8xf32>
    %8 = vector.multi_reduction <add>, %7, %cst_2 [1] : vector<8x256xf32> to vector<8xf32>
    %9 = vector.shape_cast %8 : vector<8xf32> to vector<8x1xf32>
    %cst_3 = arith.constant 3.906250e-03 : f32
    %10 = vector.broadcast %cst_3 : f32 to vector<8x1xf32>
    %11 = arith.mulf %9, %10 : vector<8x1xf32>
    %c0_4 = arith.constant 0 : index
    %c0_5 = arith.constant 0 : index
    %12 = vector.load %arg2[%c0_4, %c0_5] : memref<8x2xf32, #tpu.memory_space<vmem>>, vector<8x2xf32>
    %13 = vector.extract_strided_slice %12 {offsets = [0, 0], sizes = [8, 1], strides = [1, 1]} : vector<8x2xf32> to vector<8x1xf32>
    %cst_6 = arith.constant 9.99999974E-6 : f32
    %14 = vector.broadcast %cst_6 : f32 to vector<8x1xf32>
    %15 = arith.addf %11, %14 : vector<8x1xf32>
    %16 = math.rsqrt %15 : vector<8x1xf32>
    %17 = arith.mulf %13, %16 : vector<8x1xf32>
    %18 = vector.extract_strided_slice %12 {offsets = [0, 1], sizes = [8, 1], strides = [1, 1]} : vector<8x2xf32> to vector<8x1xf32>
    %19 = arith.mulf %4, %17 : vector<8x1xf32>
    %20 = arith.subf %18, %19 : vector<8x1xf32>
    %21 = vector.broadcast %17 : vector<8x1xf32> to vector<8x256xf32>
    %22 = arith.mulf %0, %21 : vector<8x256xf32>
    %23 = vector.broadcast %20 : vector<8x1xf32> to vector<8x256xf32>
    %24 = arith.addf %22, %23 : vector<8x256xf32>
    %c0_7 = arith.constant 0 : index
    %c0_8 = arith.constant 0 : index
    %25 = vector.load %arg3[%c0_7, %c0_8] : memref<8x256xf32, #tpu.memory_space<vmem>>, vector<8x256xf32>
    tpu.vector_store %arg3[%c0_7, %c0_8], %24 {strides = array<i32>} : memref<8x256xf32, #tpu.memory_space<vmem>>, vector<8x256xf32>,
    return
  }
  func.func @transform_0(%arg0: i32) -> (i32, i32) {
    %c0_i32 = arith.constant 0 : i32
    %c0_i32_0 = arith.constant 0 : i32
    return %arg0, %c0_i32 : i32, i32
  }
  func.func @transform_1(%arg0: i32) -> (i32, i32) {
    %c0_i32 = arith.constant 0 : i32
    %c0_i32_0 = arith.constant 0 : i32
    return %arg0, %c0_i32 : i32, i32
  }
  func.func @transform_2(%arg0: i32) -> (i32, i32) {
    %c0_i32 = arith.constant 0 : i32
    %c0_i32_0 = arith.constant 0 : i32
    return %arg0, %c0_i32 : i32, i32
  }
}

</mosaic_0001>

<bundles_post_ra>
// kernel: tpu_custom_call.1
= control target key start
LH: loop header
LB: loop body
LE: loop exit
PB: predicated region body
PF: predicated region fallthrough
CT: control target
= control target key end

     0   :  { %7 = vsyncpa [#allocation3], 0  ;;  %s183_s0 = inlined_call_operand.hbm [shape: f32[8,256], index: 0, kind: input, shape index: {}]   ;;  %s184_s1 = inlined_call_operand.vmem [shape: f32[8,2], index: 1, kind: input, shape index: {}]   ;;  %s185_s2 = inlined_call_operand.hbm [shape: f32[8,256], index: 2, kind: output, shape index: {}]  }
   0x1   :  { %8 = vsyncpa [#allocation4], 0  ;;  %s136_s9 = smov [#allocation2]   ;;  %s88_s13 = scalar_lea.hbm %s183_s0, 256 }
   0x2   :  { %s15_s10 = sshll.u32 %s136_s9, 4  ;;  %p89_p0 = scmp.ne.s32.totalorder %s183_s0, %s88_s13  ;;  %s16_s10 = int_to_ptr.vmem [resolvable:$true] %s15_s10 }
   0x3   :  { %p92_p1 = scmp.lt.u32.totalorder %s88_s13, %s183_s0 }
   0x5   :  { %p94_p2 = pnand %p92_p1, %p89_p0 }
   0x7   :  { %97 = shalt.err (!%p94_p2)
}
   0x8   :  { %s98_s18 = scalar_lea.vmem %s16_s10, 256  ;;  %p103_p4 = scmp.lt.s32.totalorder %s16_s10, %s16_s10 }
   0x9   :  { %p99_p3 = scmp.ne.s32.totalorder %s16_s10, %s98_s18  ;;  %p104_p5 = scmp.lt.s32.totalorder %s98_s18, %s98_s18 }
   0xb   :  { %p105_p6 = por %p104_p5, %p103_p4 }
   0xd   :  { %p106_p7 = pnand %p105_p6, %p99_p3 }
   0xf   :  { %109 = shalt.err (!%p106_p7)
}
  0x10   :  { %18 = dma.hbm_to_vmem [thread:$0]  %s183_s0, 256, %s16_s10, [#allocation3]  }
  0x11   :  { %132 = dma.done.wait [#allocation3], 256  }
  0x12   :  { %133 = vsyncadd [#allocation3], 4294967040  ;;  %v24_v0 = vld [vmem:[#allocation2] sm:$0xff]  ;;  %v25_v1 = vld [vmem:[#allocation2 + $0x8] sm:$0xff]  ;;  %v137_v10 = vmov 0   ;;  %v138_v14 = vmov 1  }
  0x13   :  { %v26_v2 = vadd.f32 %v25_v1, %v24_v0  ;;  %84 = vset.pattern.permute.xlu1 %v137_v10  ;;  %85 = vset.pattern.permute.xlu0 %v138_v14  ;;  %v38_v15 = vld [vmem:[%s184_s1] sm:$0xff]  ;;  %s139_s22 = smov 1   ;;  %s140_s23 = smov [#allocation5]  }
  0x14   :  { %s70_s24 = sshll.u32 %s140_s23, 4  ;;  %s71_s24 = int_to_ptr.vmem [resolvable:$true] %s70_s24 }
  0x15   :  { %27 = vadd.xlane.f32.xlu0 %v26_v2  ;;  %s110_s1 = scalar_lea.vmem %s71_s24, 256  ;;  %p115_p9 = scmp.lt.s32.totalorder %s71_s24, %s71_s24 }
  0x16   :  { %p111_p8 = scmp.ne.s32.totalorder %s71_s24, %s110_s1  ;;  %p116_p10 = scmp.lt.s32.totalorder %s110_s1, %s110_s1 }
  0x18   :  { %p117_p11 = por %p116_p10, %p115_p9 }
  0x1a   :  { %p118_p12 = pnand %p117_p11, %p111_p8 }
  0xa2   :  { %v28_v3 = vpop.xlane.xlu0 %27 }
  0xa3   :  { %v29_v4 = vmul.f32 0.00390625, %v28_v3 }
  0xa5   :  { %v30_v5 = vsub.f32 %v24_v0, %v29_v4  ;;  %v31_v6 = vsub.f32 %v25_v1, %v29_v4 }
  0xa7   :  { %v32_v7 = vmul.f32 %v30_v5, %v30_v5  ;;  %v33_v8 = vmul.f32 %v31_v6, %v31_v6 }
  0xa9   :  { %v34_v9 = vadd.f32 %v33_v8, %v32_v7 }
  0xab   :  { %35 = vadd.xlane.f32.xlu0 %v34_v9 }
 0x138   :  { %v36_v11 = vpop.xlane.xlu0 %35 }
 0x139   :  { %v37_v12 = vmul.f32 0.00390625, %v36_v11 }
 0x13b   :  { %v39_v13 = vadd.f32 1e-05, %v37_v12 }
 0x13d   :  { %86 = vrsqrt.f32 %v39_v13 }
 0x147   :  { %v87_v16 = vpop.eup %86 }
 0x148   :  { %v41_v17 = vmul.f32 %v87_v16, %v38_v15 }
 0x14a   :  { %v42_v18 = vmul.f32 %v41_v17, %v29_v4 }
 0x14c   :  { %44 = vrot.lane.b32.xlu1 %v42_v18, %s139_s22 }
 0x150   :  { %50 = vperm.xlu1 %84, %v41_v17  }
 0x1be   :  { %v45_v19 = vpop.permute.xlu1 %44 }
 0x1bf   :  { %v47_v20 = vsub.f32 %v38_v15, %v45_v19 }
 0x1c1   :  { %57 = vperm.xlu0 %85, %v47_v20  }
 0x1cf   :  { %v51_v21 = vpop.permute.xlu1 %50 }
 0x1d0   :  { %v53_v22 = vmul.f32 %v51_v21, %v24_v0  ;;  %v54_v23 = vmul.f32 %v51_v21, %v25_v1 }
 0x240   :  { %v58_v24 = vpop.permute.xlu0 %57 }
 0x241   :  { %v60_v25 = vadd.f32 %v58_v24, %v53_v22  ;;  %v61_v26 = vadd.f32 %v58_v24, %v54_v23 }
 0x243   :  { %62 = vst [vmem:[#allocation5] sm:$0xff] %v60_v25  ;;  %63 = vst [vmem:[#allocation5 + $0x8] sm:$0xff] %v61_v26 }
 0x244   :  { %121 = shalt.err (!%p118_p12)
}
 0x245   :  { %s122_s27 = scalar_lea.hbm %s185_s2, 256 }
 0x246   :  { %p123_p13 = scmp.ne.s32.totalorder %s185_s2, %s122_s27  ;;  %p126_p0 = scmp.lt.u32.totalorder %s122_s27, %s185_s2 }
 0x248   :  { %p128_p1 = pnand %p126_p0, %p123_p13 }
 0x24a   :  { %131 = shalt.err (!%p128_p1)
}
 0x24b   :  { %73 = dma.vmem_to_hbm [thread:$0]  %s71_s24, 256, %s185_s2, [#allocation4]  }
 0x24c   :  { %134 = dma.done.wait [#allocation4], 256  }
 0x24d   :  { %135 = vsyncadd [#allocation4], 4294967040 }
 0x24e   :  { %77 = vsyncpa [#allocation3], 1 }
 0x24f   :  { %78 = vsyncpa [#allocation4], 1 }

</bundles_post_ra>
